<compile_context>
chip_gen: v7x
topology: tpu7x:2x2x1
jax: 0.10.0
libtpu: 0.0.40
codegen_flags: <defaults>
</compile_context>

<pallas_src>
import jax
import jax.numpy as jnp
from jax.experimental import pallas as pl
from jax.experimental.pallas import tpu as pltpu


HID1, HID2, HID3 = 64, 64, 32
_SLAB_W = 128          # constant slab lane width (one (8,128) lane tile)
_TB_CAP = 8192         # ~5.5 MiB of f32 activations per step; fits all generations


def neat_kernel(xy_ref, slab_ref, w2_ref, out_ref):
    """Batch-on-lanes NEAT forward for one batch tile.

    xy_ref   : (2, tb)    row 0 = x (input_dim == 1), row 1 = y; batch on lanes
    slab_ref : (64, 128)  cols 0:64  rows 0:32 -> fc3 weight (out, in)
                          col 64 -> w1^T, col 65 -> b1, col 66 -> b2, col 67 rows 0:32 -> b3
                          cols 68:100 rows 0:2 -> [mu head; -0.5*sd head], col 100 -> their bias
    w2_ref   : (64, 64)   fc2 weight, (out, in)
    out_ref  : (1, tb)    (y - mu) * exp(-0.5 * s)
    """
    x = xy_ref[0:1, :]                          # (1, tb)
    y = xy_ref[1:2, :]                          # (1, tb)

    w3 = slab_ref[0:HID3, 0:HID2]               # (32, 64)
    w1 = slab_ref[:, 64:65]                     # (64, 1)
    b1 = slab_ref[:, 65:66]                     # (64, 1)
    b2 = slab_ref[:, 66:67]                     # (64, 1)
    b3 = slab_ref[0:HID3, 67:68]                # (32, 1)
    wh = slab_ref[0:2, 68:68 + HID3]            # (2, 32)  rows = [mu head, -0.5*sd head]
    bh = slab_ref[0:2, 100:101]                 # (2, 1)

    # fc1 (K == 1): outer-product broadcast multiply-add on the VPU, no MXU.
    h = jnp.maximum(w1 * x + b1, 0.0)                                             # (64, tb)
    # fc2 + relu (MXU)
    h = jnp.maximum(
        jnp.dot(w2_ref[...], h, preferred_element_type=jnp.float32) + b2, 0.0)    # (64, tb)
    # fc3 + relu (MXU)
    h = jnp.maximum(
        jnp.dot(w3, h, preferred_element_type=jnp.float32) + b3, 0.0)             # (32, tb)

    # fused mu/sd heads: single (2, 32) x (32, tb) matmul; -0.5 already folded in.
    heads = jnp.dot(wh, h, preferred_element_type=jnp.float32) + bh               # (2, tb)
    mu = heads[0:1, :]
    sd = jnp.exp(heads[1:2, :])

    out_ref[...] = (y - mu) * sd               # (1, tb) -- lane-dense unmasked store


def pack_params(params):
    """Pack the 10 nn.Linear tensors into 2 arrays in the kernel's layout.

    `params` is [(w1,b1),(w2,b2),(w3,b3),(wmu,bmu),(wsd,bsd)] with weights stored
    as (in, out) and biases as (1, out) (see init_params).
    Returns (const_slab (64,128), w2t (64,64)).
    """
    (w1, b1), (w2, b2), (w3, b3), (wmu, bmu), (wsd, bsd) = params
    assert w1.shape[0] == 1, "kernel is specialized to the original module's p == 1"

    w3_block = jnp.pad(w3.T, ((0, HID1 - HID3), (0, 0)))                    # (64, 64)
    col_w1 = w1.reshape(HID1, 1)
    col_b1 = b1.reshape(HID1, 1)
    col_b2 = b2.reshape(HID2, 1)
    col_b3 = jnp.pad(b3.reshape(HID3, 1), ((0, HID1 - HID3), (0, 0)))       # (64, 1)

    # Fused heads; fold the -0.5 of exp(-0.5 * s) into the sd head weights/bias (exact).
    wh = jnp.concatenate([wmu.T, -0.5 * wsd.T], axis=0)                     # (2, 32)
    bh = jnp.concatenate([bmu.reshape(1, 1), -0.5 * bsd.reshape(1, 1)], axis=0)
    head_block = jnp.pad(jnp.concatenate([wh, bh], axis=1),
                         ((0, HID1 - 2), (0, 0)))                           # (64, 33)

    const_slab = jnp.concatenate(
        [w3_block, col_w1, col_b1, col_b2, col_b3, head_block], axis=1)     # (64, 101)
    const_slab = jnp.pad(const_slab, ((0, 0), (0, _SLAB_W - const_slab.shape[1])))

    return const_slab, w2.T.astype(jnp.float32)


def _round_up(v, m):
    return ((v + m - 1) // m) * m


def _pick_tile(B, tb=None):
    """Pick (tb, padded_B). tb multiple of 128, capped, >=2 grid steps once B >= 256."""
    Bp0 = max(_round_up(B, 128), 128)
    if tb is not None:
        tb = max(_round_up(tb, 128), 128)
    elif Bp0 <= 128:
        tb = Bp0
    else:
        # keep >= 2 "parallel" steps so v7x's second TensorCore has work,
        # but amortize the ~0.35us per-step overhead with large tiles.
        tb = min(_TB_CAP, _round_up((Bp0 + 1) // 2, 128))
    Bp = _round_up(Bp0, tb)
    return tb, Bp


def _run_pallas(xy, const_slab, w2t, Bp, tb, single_buffer_consts):
    if single_buffer_consts:
        const_kwargs = dict(pipeline_mode=pl.Buffered(1))   # constant index_map -> 1 buffer
    else:
        const_kwargs = {}

    in_specs = [
        pl.BlockSpec((2, tb), lambda i: (0, i)),                         # x|y stream
        pl.BlockSpec((HID1, _SLAB_W), lambda i: (0, 0), **const_kwargs),  # constant slab
        pl.BlockSpec((HID1, HID2), lambda i: (0, 0), **const_kwargs),     # fc2 weight
    ]
    out_spec = pl.BlockSpec((1, tb), lambda i: (0, i))

    return pl.pallas_call(
        neat_kernel,
        out_shape=jax.ShapeDtypeStruct((1, Bp), jnp.float32),
        grid=(Bp // tb,),
        in_specs=in_specs,
        out_specs=out_spec,
        compiler_params=pltpu.CompilerParams(
            dimension_semantics=("parallel",),
            vmem_limit_bytes=32 * 1024 * 1024),
    )(xy, const_slab, w2t)


def neat_forward(x, y, packed_params, *, tb=None):
    B, in_dim = x.shape
    assert in_dim == 1, "kernel is specialized to the original module's p == 1"
    const_slab, w2t = packed_params

    tb, Bp = _pick_tile(B, tb)

    xy = jnp.concatenate([x.reshape(1, B), y.reshape(1, B)], axis=0)     # (2, B)
    if Bp != B:
        xy = jnp.pad(xy, ((0, 0), (0, Bp - B)))                          # zero-pad tail

    try:
        out = _run_pallas(xy, const_slab, w2t, Bp, tb, True)
    except Exception:
        # Fallback if pl.Buffered(1) / pipeline_mode is unsupported in this JAX build.
        out = _run_pallas(xy, const_slab, w2t, Bp, tb, False)

    return out[0, :B].reshape(B, 1)


def init_params(key, input_dim):
    """Deterministic init mimicking nn.Linear default (uniform +/- 1/sqrt(fan_in)).
    Weights stored as (in, out); biases as (1, out)."""
    dims = [(input_dim, HID1), (HID1, HID2), (HID2, HID3), (HID3, 1), (HID3, 1)]
    params = []
    for (fan_in, fan_out) in dims:
        key, kw, kb = jax.random.split(key, 3)
        bound = 1.0 / (fan_in ** 0.5)
        w = jax.random.uniform(kw, (fan_in, fan_out), jnp.float32, -bound, bound)
        b = jax.random.uniform(kb, (1, fan_out), jnp.float32, -bound, bound)
        params.append((w, b))
    return params


def neat_reference(x, y, params):
    (w1, b1), (w2, b2), (w3, b3), (wmu, bmu), (wsd, bsd) = params
    h = jnp.maximum(x @ w1 + b1, 0.0)
    h = jnp.maximum(h @ w2 + b2, 0.0)
    h = jnp.maximum(h @ w3 + b3, 0.0)
    mu = h @ wmu + bmu
    sd = jnp.exp(-0.5 * (h @ wsd + bsd))
    return (y - mu) * sd


if __name__ == "__main__":
    input_dim = 1          # p = 1 in the original script

    key = jax.random.PRNGKey(0)
    kp, kx, ky, kx2, ky2 = jax.random.split(key, 5)

    params = init_params(kp, input_dim)
    packed = pack_params(params)

    # Case 1: small batch, single grid step (B = 128).
    B = 128
    x = jax.random.normal(kx, (B, input_dim), jnp.float32)
    # y ~ chi-square(df=4) == sum of 4 squared standard normals
    y = jnp.sum(jax.random.normal(ky, (B, 4), jnp.float32) ** 2, axis=-1, keepdims=True)
    pred = jax.block_until_ready(neat_forward(x, y, packed))
    ref = neat_reference(x, y, params)
    assert pred.shape == (B, 1)
    assert jnp.allclose(pred, ref, atol=1e-4, rtol=1e-4), "mismatch vs reference (B=128)"

    # Case 2: ragged batch exercising padding + multi-step parallel grid (B = 1000).
    B2 = 1000
    x2 = jax.random.normal(kx2, (B2, input_dim), jnp.float32)
    y2 = jnp.sum(jax.random.normal(ky2, (B2, 4), jnp.float32) ** 2, axis=-1, keepdims=True)
    pred2 = jax.block_until_ready(neat_forward(x2, y2, packed))
    ref2 = neat_reference(x2, y2, params)
    assert pred2.shape == (B2, 1)
    assert jnp.allclose(pred2, ref2, atol=1e-4, rtol=1e-4), "mismatch vs reference (B=1000)"

    print("KERNEL_OK")
</pallas_src>

<mosaic_0001>
module attributes {stable_mosaic.version = 11 : i64} {
  func.func @neat_kernel(%arg0: i32, %arg1: memref<2x128xf32, #tpu.memory_space<vmem>>, %arg2: memref<64x128xf32, #tpu.memory_space<vmem>>, %arg3: memref<64x64xf32, #tpu.memory_space<vmem>>, %arg4: memref<1x128xf32, #tpu.memory_space<vmem>>) attributes {dimension_semantics = [#tpu.dimension_semantics<parallel>], iteration_bounds = array<i64: 1>, scalar_prefetch = 0 : i64, scratch_operands = 0 : i64, tpu.core_type = #tpu.core_type<tc>, window_params = [{transform_indices = @transform_0, window_bounds = array<i64: 2, 128>}, {pipeline_mode = #tpu.pipeline_mode<synchronous>, transform_indices = @transform_1, window_bounds = array<i64: 64, 128>}, {pipeline_mode = #tpu.pipeline_mode<synchronous>, transform_indices = @transform_2, window_bounds = array<i64: 64, 64>}, {transform_indices = @transform_3, window_bounds = array<i64: 1, 128>}]} {
    %c0 = arith.constant 0 : index
    %c0_0 = arith.constant 0 : index
    %0 = vector.load %arg1[%c0, %c0_0] : memref<2x128xf32, #tpu.memory_space<vmem>>, vector<1x128xf32>
    %c1 = arith.constant 1 : index
    %c0_1 = arith.constant 0 : index
    %1 = vector.load %arg1[%c1, %c0_1] : memref<2x128xf32, #tpu.memory_space<vmem>>, vector<1x128xf32>
    %c0_2 = arith.constant 0 : index
    %c0_3 = arith.constant 0 : index
    %2 = vector.load %arg2[%c0_2, %c0_3] : memref<64x128xf32, #tpu.memory_space<vmem>>, vector<32x64xf32>
    %c0_4 = arith.constant 0 : index
    %c64 = arith.constant 64 : index
    %3 = vector.load %arg2[%c0_4, %c64] : memref<64x128xf32, #tpu.memory_space<vmem>>, vector<64x1xf32>
    %c0_5 = arith.constant 0 : index
    %c65 = arith.constant 65 : index
    %4 = vector.load %arg2[%c0_5, %c65] : memref<64x128xf32, #tpu.memory_space<vmem>>, vector<64x1xf32>
    %c0_6 = arith.constant 0 : index
    %c66 = arith.constant 66 : index
    %5 = vector.load %arg2[%c0_6, %c66] : memref<64x128xf32, #tpu.memory_space<vmem>>, vector<64x1xf32>
    %c0_7 = arith.constant 0 : index
    %c67 = arith.constant 67 : index
    %6 = vector.load %arg2[%c0_7, %c67] : memref<64x128xf32, #tpu.memory_space<vmem>>, vector<32x1xf32>
    %c0_8 = arith.constant 0 : index
    %c68 = arith.constant 68 : index
    %7 = vector.load %arg2[%c0_8, %c68] : memref<64x128xf32, #tpu.memory_space<vmem>>, vector<2x32xf32>
    %c0_9 = arith.constant 0 : index
    %c100 = arith.constant 100 : index
    %8 = vector.load %arg2[%c0_9, %c100] : memref<64x128xf32, #tpu.memory_space<vmem>>, vector<2x1xf32>
    %9 = vector.broadcast %3 : vector<64x1xf32> to vector<64x128xf32>
    %10 = vector.broadcast %0 : vector<1x128xf32> to vector<64x128xf32>
    %11 = arith.mulf %9, %10 : vector<64x128xf32>
    %12 = vector.broadcast %4 : vector<64x1xf32> to vector<64x128xf32>
    %13 = arith.addf %11, %12 : vector<64x128xf32>
    %cst = arith.constant 0.000000e+00 : f32
    %14 = vector.broadcast %cst : f32 to vector<64x128xf32>
    %15 = arith.maximumf %13, %14 : vector<64x128xf32>
    %c0_10 = arith.constant 0 : index
    %c0_11 = arith.constant 0 : index
    %16 = vector.load %arg3[%c0_10, %c0_11] : memref<64x64xf32, #tpu.memory_space<vmem>>, vector<64x64xf32>
    %cst_12 = arith.constant dense<0.000000e+00> : vector<64x128xf32>
    %17 = tpu.matmul %16, %15, %cst_12 {dimension_numbers = #tpu.dot_dimension_numbers<[1], [0], [0], [1], [0, 0, 1, 1], [], []>} : vector<64x64xf32>, vector<64x128xf32>, vector<64x128xf32> -> vector<64x128xf32>
    %18 = vector.broadcast %5 : vector<64x1xf32> to vector<64x128xf32>
    %19 = arith.addf %17, %18 : vector<64x128xf32>
    %cst_13 = arith.constant 0.000000e+00 : f32
    %20 = vector.broadcast %cst_13 : f32 to vector<64x128xf32>
    %21 = arith.maximumf %19, %20 : vector<64x128xf32>
    %cst_14 = arith.constant dense<0.000000e+00> : vector<32x128xf32>
    %22 = tpu.matmul %2, %21, %cst_14 {dimension_numbers = #tpu.dot_dimension_numbers<[1], [0], [0], [1], [0, 0, 1, 1], [], []>} : vector<32x64xf32>, vector<64x128xf32>, vector<32x128xf32> -> vector<32x128xf32>
    %23 = vector.broadcast %6 : vector<32x1xf32> to vector<32x128xf32>
    %24 = arith.addf %22, %23 : vector<32x128xf32>
    %cst_15 = arith.constant 0.000000e+00 : f32
    %25 = vector.broadcast %cst_15 : f32 to vector<32x128xf32>
    %26 = arith.maximumf %24, %25 : vector<32x128xf32>
    %cst_16 = arith.constant dense<0.000000e+00> : vector<2x128xf32>
    %27 = tpu.matmul %7, %26, %cst_16 {dimension_numbers = #tpu.dot_dimension_numbers<[1], [0], [0], [1], [0, 0, 1, 1], [], []>} : vector<2x32xf32>, vector<32x128xf32>, vector<2x128xf32> -> vector<2x128xf32>
    %28 = vector.broadcast %8 : vector<2x1xf32> to vector<2x128xf32>
    %29 = arith.addf %27, %28 : vector<2x128xf32>
    %30 = vector.extract_strided_slice %29 {offsets = [0, 0], sizes = [1, 128], strides = [1, 1]} : vector<2x128xf32> to vector<1x128xf32>
    %31 = vector.extract_strided_slice %29 {offsets = [1, 0], sizes = [1, 128], strides = [1, 1]} : vector<2x128xf32> to vector<1x128xf32>
    %32 = math.exp %31 : vector<1x128xf32>
    %33 = arith.subf %1, %30 : vector<1x128xf32>
    %34 = arith.mulf %33, %32 : vector<1x128xf32>
    %c0_17 = arith.constant 0 : index
    %c0_18 = arith.constant 0 : index
    %35 = vector.load %arg4[%c0_17, %c0_18] : memref<1x128xf32, #tpu.memory_space<vmem>>, vector<1x128xf32>
    tpu.vector_store %arg4[%c0_17, %c0_18], %34 {strides = array<i32>} : memref<1x128xf32, #tpu.memory_space<vmem>>, vector<1x128xf32>,
    return
  }
  func.func @transform_0(%arg0: i32) -> (i32, i32) {
    %c0_i32 = arith.constant 0 : i32
    %c0_i32_0 = arith.constant 0 : i32
    return %c0_i32, %arg0 : i32, i32
  }
  func.func @transform_1(%arg0: i32) -> (i32, i32) {
    %c0_i32 = arith.constant 0 : i32
    %c0_i32_0 = arith.constant 0 : i32
    %c0_i32_1 = arith.constant 0 : i32
    return %c0_i32, %c0_i32_0 : i32, i32
  }
  func.func @transform_2(%arg0: i32) -> (i32, i32) {
    %c0_i32 = arith.constant 0 : i32
    %c0_i32_0 = arith.constant 0 : i32
    %c0_i32_1 = arith.constant 0 : i32
    return %c0_i32, %c0_i32_0 : i32, i32
  }
  func.func @transform_3(%arg0: i32) -> (i32, i32) {
    %c0_i32 = arith.constant 0 : i32
    %c0_i32_0 = arith.constant 0 : i32
    return %c0_i32, %arg0 : i32, i32
  }
}

module attributes {stable_mosaic.version = 11 : i64} {
  func.func @neat_kernel(%arg0: i32, %arg1: memref<2x128xf32, #tpu.memory_space<vmem>>, %arg2: memref<64x128xf32, #tpu.memory_space<vmem>>, %arg3: memref<64x64xf32, #tpu.memory_space<vmem>>, %arg4: memref<1x128xf32, #tpu.memory_space<vmem>>) attributes {dimension_semantics = [#tpu.dimension_semantics<parallel>], iteration_bounds = array<i64: 1>, scalar_prefetch = 0 : i64, scratch_operands = 0 : i64, tpu.core_type = #tpu.core_type<tc>, window_params = [{transform_indices = @transform_0, window_bounds = array<i64: 2, 128>}, {pipeline_mode = #tpu.pipeline_mode<synchronous>, transform_indices = @transform_1, window_bounds = array<i64: 64, 128>}, {pipeline_mode = #tpu.pipeline_mode<synchronous>, transform_indices = @transform_2, window_bounds = array<i64: 64, 64>}, {transform_indices = @transform_3, window_bounds = array<i64: 1, 128>}]} {
    %c0 = arith.constant 0 : index
    %c0_0 = arith.constant 0 : index
    %0 = vector.load %arg1[%c0, %c0_0] : memref<2x128xf32, #tpu.memory_space<vmem>>, vector<1x128xf32>
    %c1 = arith.constant 1 : index
    %c0_1 = arith.constant 0 : index
    %1 = vector.load %arg1[%c1, %c0_1] : memref<2x128xf32, #tpu.memory_space<vmem>>, vector<1x128xf32>
    %c0_2 = arith.constant 0 : index
    %c0_3 = arith.constant 0 : index
    %2 = vector.load %arg2[%c0_2, %c0_3] : memref<64x128xf32, #tpu.memory_space<vmem>>, vector<32x64xf32>
    %c0_4 = arith.constant 0 : index
    %c64 = arith.constant 64 : index
    %3 = vector.load %arg2[%c0_4, %c64] : memref<64x128xf32, #tpu.memory_space<vmem>>, vector<64x1xf32>
    %c0_5 = arith.constant 0 : index
    %c65 = arith.constant 65 : index
    %4 = vector.load %arg2[%c0_5, %c65] : memref<64x128xf32, #tpu.memory_space<vmem>>, vector<64x1xf32>
    %c0_6 = arith.constant 0 : index
    %c66 = arith.constant 66 : index
    %5 = vector.load %arg2[%c0_6, %c66] : memref<64x128xf32, #tpu.memory_space<vmem>>, vector<64x1xf32>
    %c0_7 = arith.constant 0 : index
    %c67 = arith.constant 67 : index
    %6 = vector.load %arg2[%c0_7, %c67] : memref<64x128xf32, #tpu.memory_space<vmem>>, vector<32x1xf32>
    %c0_8 = arith.constant 0 : index
    %c68 = arith.constant 68 : index
    %7 = vector.load %arg2[%c0_8, %c68] : memref<64x128xf32, #tpu.memory_space<vmem>>, vector<2x32xf32>
    %c0_9 = arith.constant 0 : index
    %c100 = arith.constant 100 : index
    %8 = vector.load %arg2[%c0_9, %c100] : memref<64x128xf32, #tpu.memory_space<vmem>>, vector<2x1xf32>
    %9 = vector.broadcast %3 : vector<64x1xf32> to vector<64x128xf32>
    %10 = vector.broadcast %0 : vector<1x128xf32> to vector<64x128xf32>
    %11 = arith.mulf %9, %10 : vector<64x128xf32>
    %12 = vector.broadcast %4 : vector<64x1xf32> to vector<64x128xf32>
    %13 = arith.addf %11, %12 : vector<64x128xf32>
    %cst = arith.constant 0.000000e+00 : f32
    %14 = vector.broadcast %cst : f32 to vector<64x128xf32>
    %15 = arith.maximumf %13, %14 : vector<64x128xf32>
    %c0_10 = arith.constant 0 : index
    %c0_11 = arith.constant 0 : index
    %16 = vector.load %arg3[%c0_10, %c0_11] : memref<64x64xf32, #tpu.memory_space<vmem>>, vector<64x64xf32>
    %cst_12 = arith.constant dense<0.000000e+00> : vector<64x128xf32>
    %17 = tpu.matmul %16, %15, %cst_12 {dimension_numbers = #tpu.dot_dimension_numbers<[1], [0], [0], [1], [0, 0, 1, 1], [], []>} : vector<64x64xf32>, vector<64x128xf32>, vector<64x128xf32> -> vector<64x128xf32>
    %18 = vector.broadcast %5 : vector<64x1xf32> to vector<64x128xf32>
    %19 = arith.addf %17, %18 : vector<64x128xf32>
    %cst_13 = arith.constant 0.000000e+00 : f32
    %20 = vector.broadcast %cst_13 : f32 to vector<64x128xf32>
    %21 = arith.maximumf %19, %20 : vector<64x128xf32>
    %cst_14 = arith.constant dense<0.000000e+00> : vector<32x128xf32>
    %22 = tpu.matmul %2, %21, %cst_14 {dimension_numbers = #tpu.dot_dimension_numbers<[1], [0], [0], [1], [0, 0, 1, 1], [], []>} : vector<32x64xf32>, vector<64x128xf32>, vector<32x128xf32> -> vector<32x128xf32>
    %23 = vector.broadcast %6 : vector<32x1xf32> to vector<32x128xf32>
    %24 = arith.addf %22, %23 : vector<32x128xf32>
    %cst_15 = arith.constant 0.000000e+00 : f32
    %25 = vector.broadcast %cst_15 : f32 to vector<32x128xf32>
    %26 = arith.maximumf %24, %25 : vector<32x128xf32>
    %cst_16 = arith.constant dense<0.000000e+00> : vector<2x128xf32>
    %27 = tpu.matmul %7, %26, %cst_16 {dimension_numbers = #tpu.dot_dimension_numbers<[1], [0], [0], [1], [0, 0, 1, 1], [], []>} : vector<2x32xf32>, vector<32x128xf32>, vector<2x128xf32> -> vector<2x128xf32>
    %28 = vector.broadcast %8 : vector<2x1xf32> to vector<2x128xf32>
    %29 = arith.addf %27, %28 : vector<2x128xf32>
    %30 = vector.extract_strided_slice %29 {offsets = [0, 0], sizes = [1, 128], strides = [1, 1]} : vector<2x128xf32> to vector<1x128xf32>
    %31 = vector.extract_strided_slice %29 {offsets = [1, 0], sizes = [1, 128], strides = [1, 1]} : vector<2x128xf32> to vector<1x128xf32>
    %32 = math.exp %31 : vector<1x128xf32>
    %33 = arith.subf %1, %30 : vector<1x128xf32>
    %34 = arith.mulf %33, %32 : vector<1x128xf32>
    %c0_17 = arith.constant 0 : index
    %c0_18 = arith.constant 0 : index
    %35 = vector.load %arg4[%c0_17, %c0_18] : memref<1x128xf32, #tpu.memory_space<vmem>>, vector<1x128xf32>
    tpu.vector_store %arg4[%c0_17, %c0_18], %34 {strides = array<i32>} : memref<1x128xf32, #tpu.memory_space<vmem>>, vector<1x128xf32>,
    return
  }
  func.func @transform_0(%arg0: i32) -> (i32, i32) {
    %c0_i32 = arith.constant 0 : i32
    %c0_i32_0 = arith.constant 0 : i32
    return %c0_i32, %arg0 : i32, i32
  }
  func.func @transform_1(%arg0: i32) -> (i32, i32) {
    %c0_i32 = arith.constant 0 : i32
    %c0_i32_0 = arith.constant 0 : i32
    %c0_i32_1 = arith.constant 0 : i32
    return %c0_i32, %c0_i32_0 : i32, i32
  }
  func.func @transform_2(%arg0: i32) -> (i32, i32) {
    %c0_i32 = arith.constant 0 : i32
    %c0_i32_0 = arith.constant 0 : i32
    %c0_i32_1 = arith.constant 0 : i32
    return %c0_i32, %c0_i32_0 : i32, i32
  }
  func.func @transform_3(%arg0: i32) -> (i32, i32) {
    %c0_i32 = arith.constant 0 : i32
    %c0_i32_0 = arith.constant 0 : i32
    return %c0_i32, %arg0 : i32, i32
  }
}

</mosaic_0001>

<bundles_post_ra>
// kernel: tpu_custom_call.1
= control target key start
LH: loop header
LB: loop body
LE: loop exit
PB: predicated region body
PF: predicated region fallthrough
CT: control target
= control target key end

     0   :  { %8 = vsyncpa [#allocation3], 0  ;;  %s970_s0 = inlined_call_operand.hbm [shape: f32[2,128], index: 0, kind: input, shape index: {}]   ;;  %s971_s1 = inlined_call_operand.hbm [shape: f32[64,128], index: 1, kind: input, shape index: {}]   ;;  %s972_s2 = inlined_call_operand.hbm [shape: f32[64,64], index: 2, kind: input, shape index: {}]   ;;  %s973_s3 = inlined_call_operand.hbm [shape: f32[1,128], index: 3, kind: output, shape index: {}]  }
   0x1   :  { %9 = vsyncpa [#allocation6], 0 }
   0x2   :  { %10 = vsyncpa [#allocation4], 0  ;;  %s841_s12 = smov [#allocation5]   ;;  %s747_s16 = scalar_lea.hbm %s971_s1, 1024 }
   0x3   :  { %s26_s13 = sshll.u32 %s841_s12, 4  ;;  %p748_p0 = scmp.ne.s32.totalorder %s971_s1, %s747_s16  ;;  %s27_s13 = int_to_ptr.vmem [resolvable:$true] %s26_s13 }
   0x4   :  { %p751_p1 = scmp.lt.u32.totalorder %s747_s16, %s971_s1 }
   0x6   :  { %p753_p2 = pnand %p751_p1, %p748_p0 }
   0x8   :  { %756 = shalt.err (!%p753_p2)
}
   0x9   :  { %s757_s21 = scalar_lea.vmem %s27_s13, 1024  ;;  %p762_p4 = scmp.lt.s32.totalorder %s27_s13, %s27_s13 }
   0xa   :  { %p758_p3 = scmp.ne.s32.totalorder %s27_s13, %s757_s21  ;;  %p763_p5 = scmp.lt.s32.totalorder %s757_s21, %s757_s21 }
   0xc   :  { %p764_p6 = por %p763_p5, %p762_p4 }
   0xe   :  { %p765_p7 = pnand %p764_p6, %p758_p3 }
  0x10   :  { %768 = shalt.err (!%p765_p7)
}
  0x11   :  { %s842_s22 = smov 128   ;;  %s843_s23 = smov 8  }
  0x12   :  { %32 = dma.hbm_to_vmem [thread:$0]  %s971_s1, 1024, %s27_s13, [#allocation6], %s842_s22, %s842_s22, %s843_s23  }
  0x13   :  { %s844_s26 = smov [#allocation2]   ;;  %s845_s28 = smov [#allocation7]  }
  0x14   :  { %s17_s27 = sshll.u32 %s844_s26, 4  ;;  %s38_s29 = sshll.u32 %s845_s28, 4  ;;  %s18_s27 = int_to_ptr.vmem [resolvable:$true] %s17_s27  ;;  %s39_s29 = int_to_ptr.vmem [resolvable:$true] %s38_s29 }
  0x15   :  { %s769_s5 = scalar_lea.hbm %s970_s0, 32 }
  0x16   :  { %p770_p8 = scmp.ne.s32.totalorder %s970_s0, %s769_s5  ;;  %p773_p9 = scmp.lt.u32.totalorder %s769_s5, %s970_s0 }
  0x18   :  { %p775_p10 = pnand %p773_p9, %p770_p8 }
  0x1a   :  { %778 = shalt.err (!%p775_p10)
}
  0x1b   :  { %s779_s1 = scalar_lea.vmem %s18_s27, 32  ;;  %p784_p12 = scmp.lt.s32.totalorder %s18_s27, %s18_s27 }
  0x1c   :  { %p780_p11 = scmp.ne.s32.totalorder %s18_s27, %s779_s1  ;;  %p785_p13 = scmp.lt.s32.totalorder %s779_s1, %s779_s1 }
  0x1e   :  { %p786_p0 = por %p785_p13, %p784_p12 }
  0x20   :  { %p787_p1 = pnand %p786_p0, %p780_p11 }
  0x22   :  { %790 = shalt.err (!%p787_p1)
}
  0x23   :  { %20 = dma.hbm_to_vmem [thread:$0]  %s970_s0, 32, %s18_s27, [#allocation3]  }
  0x24   :  { %s791_s14 = scalar_lea.hbm %s972_s2, 1024 }
  0x25   :  { %p792_p2 = scmp.ne.s32.totalorder %s972_s2, %s791_s14  ;;  %p795_p3 = scmp.lt.u32.totalorder %s791_s14, %s972_s2 }
  0x27   :  { %p797_p4 = pnand %p795_p3, %p792_p2 }
  0x29   :  { %800 = shalt.err (!%p797_p4)
}
  0x2a   :  { %s801_s19 = scalar_lea.vmem %s39_s29, 1024  ;;  %p806_p6 = scmp.lt.s32.totalorder %s39_s29, %s39_s29 }
  0x2b   :  { %p802_p5 = scmp.ne.s32.totalorder %s39_s29, %s801_s19  ;;  %p807_p7 = scmp.lt.s32.totalorder %s801_s19, %s801_s19 }
  0x2d   :  { %p808_p8 = por %p807_p7, %p806_p6 }
  0x2f   :  { %p809_p9 = pnand %p808_p8, %p802_p5 }
  0x31   :  { %812 = shalt.err (!%p809_p9)
}
  0x32   :  { %44 = dma.hbm_to_vmem [thread:$0]  %s972_s2, 1024, %s39_s29, [#allocation6], %s842_s22, %s842_s22, %s843_s23  }
  0x33   :  { %835 = dma.done.wait [#allocation3], 32  }
  0x34   :  { %836 = vsyncadd [#allocation3], 4294967264 }
  0x35   :  { %837 = dma.done.wait [#allocation6], 2048  }
  0x36   :  { %838 = vsyncadd [#allocation6], 4294965248  ;;  %v846_v0 = vmov 65   ;;  %v847_v1 = vmov 64   ;;  %v918_v2 = vld [vmem:[#allocation5] sm:$0xff]  ;;  %v922_v3 = vld [vmem:[#allocation5 + $0x8] sm:$0xff] }
  0x37   :  { %730 = vset.pattern.permute.xlu1 %v846_v0  ;;  %729 = vset.pattern.permute.xlu0 %v847_v1  ;;  %v924_v4 = vld [vmem:[#allocation5 + $0x10] sm:$0xff]  ;;  %v928_v5 = vld [vmem:[#allocation5 + $0x18] sm:$0xff]  ;;  %v65_v6 = vld [vmem:[#allocation5 + $0x28] sm:$0xff]  ;;  %vm209_vm0 = vcmask 523264   ;;  %v848_v11 = vmov 66   ;;  %s850_s2 = smov 60  }
  0x38   :  { %122 = vperm.xlu1 %730, %v918_v2   ;;  %71 = vperm.xlu0 %729, %v918_v2   ;;  %v64_v7 = vld [vmem:[#allocation5 + $0x20] sm:$0xff]  ;;  %v66_v8 = vld [vmem:[#allocation5 + $0x30] sm:$0xff]  ;;  %v67_v9 = vld [vmem:[#allocation5 + $0x38] sm:$0xff]  ;;  %vm852_vm1 = vmmov 0   ;;  %vm471_vm2 = vcmask 261120   ;;  %s855_s21 = smov [#allocation8]  }
  0x39   :  { %v169_v10 = vld [vmem:[#allocation7] sm:$0xff]  ;;  %659 = vmatprep.mubr.msk.f32.mxu1 %vm209_vm0, %v918_v2  ;;  %v568_v14 = vld [vmem:[#allocation2] ss:$0 sm:$0xff]  ;;  %v170_v57 = vld [vmem:[#allocation7 + $0x8] sm:$0xff]  ;;  %s558_s22 = sshll.u32 %s855_s21, 4  ;;  %s559_s22 = int_to_ptr.vmem [resolvable:$true] %s558_s22 }
  0x3a   :  { %631 = vmatprep.mubr.msk.f32.mxu0 %vm209_vm0, %v169_v10  ;;  %v171_v58 = vld [vmem:[#allocation7 + $0x10] sm:$0xff]  ;;  %v172_v59 = vld [vmem:[#allocation7 + $0x18] sm:$0xff]  ;;  %v173_v60 = vld [vmem:[#allocation7 + $0x20] sm:$0xff]  ;;  %s813_s23 = scalar_lea.vmem %s559_s22, 16  ;;  %s817_s24 = scalar_lea.vmem %s559_s22, 32 }
  0x3b   :  { %v174_v61 = vld [vmem:[#allocation7 + $0x28] sm:$0xff]  ;;  %v175_v62 = vld [vmem:[#allocation7 + $0x30] sm:$0xff]  ;;  %v176_v63 = vld [vmem:[#allocation7 + $0x38] sm:$0xff]  ;;  %p814_p10 = scmp.ne.s32.totalorder %s559_s22, %s813_s23  ;;  %p818_p11 = scmp.lt.s32.totalorder %s559_s22, %s559_s22 }
  0x3c   :  { %126 = vperm.xlu1 %730, %v922_v3   ;;  %732 = vset.pattern.permute.xlu0 %v846_v0  ;;  %p819_p12 = scmp.lt.s32.totalorder %s817_s24, %s813_s23 }
  0x3d   :  { %130 = vperm.xlu0 %732, %v924_v4  }
  0x3e   :  { %p820_p13 = por %p819_p12, %p818_p11 }
  0x40   :  { %731 = vset.pattern.permute.xlu1 %v847_v1  ;;  %p821_p0 = pnand %p820_p13, %p814_p10 }
  0x41   :  { %86 = vperm.xlu1 %731, %v928_v5   ;;  %733 = vset.pattern.permute.xlu0 %v847_v1 }
  0x42   :  { %76 = vperm.xlu0 %733, %v922_v3  }
  0x45   :  { %734 = vset.pattern.permute.xlu1 %v846_v0 }
  0x46   :  { %134 = vperm.xlu1 %734, %v928_v5   ;;  %81 = vperm.xlu0 %733, %v924_v4  }
  0x4a   :  { %735 = vset.pattern.permute.xlu1 %v847_v1  ;;  %96 = vperm.xlu0 %733, %v65_v6  }
  0x4b   :  { %91 = vperm.xlu1 %735, %v64_v7  }
  0x4e   :  { %101 = vperm.xlu0 %733, %v66_v8  }
  0x4f   :  { %736 = vset.pattern.permute.xlu1 %v846_v0 }
  0x50   :  { %138 = vperm.xlu1 %736, %v64_v7  }
  0x52   :  { %738 = vset.pattern.permute.xlu0 %v846_v0 }
  0x53   :  { %146 = vperm.xlu0 %738, %v66_v8  }
  0x54   :  { %142 = vperm.xlu1 %736, %v65_v6  }
  0x57   :  { %741 = vset.pattern.permute.xlu0 %v848_v11 }
  0x58   :  { %737 = vset.pattern.permute.xlu1 %v847_v1  ;;  %182 = vperm.xlu0 %741, %v922_v3   ;;  %v68_v1 = vld [vmem:[#allocation5] sm:$0x3] }
  0x59   :  { %106 = vperm.xlu1 %737, %v67_v9  }
  0x5c   :  { %194 = vperm.xlu0 %741, %v64_v7  }
  0x5d   :  { %739 = vset.pattern.permute.xlu1 %v846_v0  ;;  %v849_v0 = vmov 67  }
  0x5e   :  { %150 = vperm.xlu1 %739, %v67_v9  }
  0x60   :  { %202 = vperm.xlu0 %741, %v66_v8  }
  0x62   :  { %740 = vset.pattern.permute.xlu1 %v848_v11 }
  0x63   :  { %178 = vperm.xlu1 %740, %v918_v2  }
  0x64   :  { %742 = vset.pattern.permute.xlu0 %v849_v0 }
  0x65   :  { %349 = vperm.xlu0 %742, %v918_v2  }
  0x67   :  { %186 = vperm.xlu1 %740, %v924_v4  }
  0x69   :  { %364 = vperm.xlu0 %742, %v928_v5  }
  0x6b   :  { %190 = vperm.xlu1 %740, %v928_v5  }
  0x6f   :  { %198 = vperm.xlu1 %740, %v65_v6  }
  0x73   :  { %206 = vperm.xlu1 %740, %v67_v9  }
  0x77   :  { %743 = vset.pattern.permute.xlu1 %v849_v0 }
  0x78   :  { %354 = vperm.xlu1 %743, %v922_v3  }
  0x7c   :  { %359 = vperm.xlu1 %743, %v924_v4  }
  0x80   :  { %469 = vrot.lane.b32.xlu1 %v68_v1, %s850_s2 }
  0xb7   :  { %v123_v12 = vpop.permute.xlu1 %122  ;;  %v72_v13 = vpop.permute.xlu0 %71 }
  0xb8   :  { %v113_v17 = vmul.f32 %v568_v14, %v72_v13 }
  0xba   :  { %v153_v20 = vadd.f32 %v123_v12, %v113_v17 }
  0xbb   :  { %v127_v15 = vpop.permute.xlu1 %126 }
  0xbc   :  { %v131_v16 = vpop.permute.xlu0 %130  ;;  %v161_v26 = vmax.f32 %v153_v20, 0.0 }
  0xc0   :  { %v87_v18 = vpop.permute.xlu1 %86 }
  0xc1   :  { %v77_v19 = vpop.permute.xlu0 %76  ;;  %v116_v22 = vmul.f32 %v568_v14, %v87_v18 }
  0xc2   :  { %v114_v21 = vmul.f32 %v568_v14, %v77_v19 }
  0xc4   :  { %v154_v23 = vadd.f32 %v127_v15, %v114_v21 }
  0xc5   :  { %v135_v24 = vpop.permute.xlu1 %134  ;;  %v82_v25 = vpop.permute.xlu0 %81 }
  0xc6   :  { %v162_v27 = vmax.f32 %v154_v23, 0.0  ;;  %v156_v28 = vadd.f32 %v135_v24, %v116_v22  ;;  %v115_v29 = vmul.f32 %v568_v14, %v82_v25 }
  0xc8   :  { %v155_v30 = vadd.f32 %v131_v16, %v115_v29  ;;  %v676_v31 = vpack.c.bf16 %v162_v27, %v161_v26  ;;  %v164_v32 = vmax.f32 %v156_v28, 0.0 }
  0xc9   :  { %v97_v36 = vpop.permute.xlu0 %96 }
  0xca   :  { %v163_v33 = vmax.f32 %v155_v30, 0.0  ;;  %v92_v34 = vpop.permute.xlu1 %91  ;;  %677 = vmatprep.subr.bf16.mxu0 %v676_v31  ;;  %v118_v39 = vmul.f32 %v568_v14, %v97_v36 }
  0xcb   :  { %679 = vmatpush3.bf16.msra.mxu0 %v676_v31  ;;  %v117_v38 = vmul.f32 %v568_v14, %v92_v34 }
  0xcc   :  { %v680_v35 = vpack.c.bf16 %v164_v32, %v163_v33 }
  0xcd   :  { %v102_v41 = vpop.permute.xlu0 %101 }
  0xce   :  { %681 = vmatprep.subr.bf16.mxu0 %v680_v35  ;;  %v119_v49 = vmul.f32 %v568_v14, %v102_v41  ;;  %v851_v41 = vmov 0.0|0.0  }
  0xcf   :  { %v139_v37 = vpop.permute.xlu1 %138  ;;  %683 = vmatpush3.bf16.msra.mxu0 %v680_v35 }
  0xd0   :  { %v157_v40 = vadd.f32 %v139_v37, %v117_v38 }
  0xd2   :  { %v165_v44 = vmax.f32 %v157_v40, 0.0  ;;  %v147_v48 = vpop.permute.xlu0 %146 }
  0xd3   :  { %v143_v42 = vpop.permute.xlu1 %142  ;;  %v159_v50 = vadd.f32 %v147_v48, %v119_v49 }
  0xd4   :  { %v158_v43 = vadd.f32 %v143_v42, %v118_v39  ;;  %v853_v42 = vmov 0.0  }
  0xd5   :  { %v167_v54 = vmax.f32 %v159_v50, 0.0 }
  0xd6   :  { %v166_v45 = vmax.f32 %v158_v43, 0.0  ;;  %v854_v43 = vmov 100  }
  0xd7   :  { %v183_v8 = vpop.permute.xlu0 %182  ;;  %744 = vset.pattern.permute.xlu0 %v854_v43 }
  0xd8   :  { %v684_v46 = vpack.c.bf16 %v166_v45, %v165_v44  ;;  %v107_v47 = vpop.permute.xlu1 %106  ;;  %466 = vperm.xlu0 %744, %v68_v1   ;;  %v55_v1 = vld [vmem:[#allocation2 + $0x1] sm:$0x1] }
  0xd9   :  { %v120_v51 = vmul.f32 %v568_v14, %v107_v47 }
  0xda   :  { %685 = vmatprep.subr.bf16.mxu0 %v684_v46 }
  0xdb   :  { %687 = vmatpush3.bf16.msra.mxu0 %v684_v46  ;;  %v195_v21 = vpop.permute.xlu0 %194 }
  0xdd   :  { %v151_v52 = vpop.permute.xlu1 %150 }
  0xde   :  { %v160_v53 = vadd.f32 %v151_v52, %v120_v51 }
  0xdf   :  { %v203_v33 = vpop.permute.xlu0 %202 }
  0xe0   :  { %v168_v55 = vmax.f32 %v160_v53, 0.0 }
  0xe2   :  { %v688_v56 = vpack.c.bf16 %v168_v55, %v167_v54  ;;  %v179_v6 = vpop.permute.xlu1 %178 }
  0xe4   :  { %689 = vmatprep.subr.bf16.mxu0 %v688_v56  ;;  %v350_v44 = vpop.permute.xlu0 %349 }
  0xe5   :  { %691 = vmatpush3.bf16.msra.mxu0 %v688_v56 }
  0xe6   :  { %v187_v7 = vpop.permute.xlu1 %186 }
  0xe8   :  { %632 = vmatmul.mubr.msk.f32.vlgmr.msra.gmra.mrb[0].mxu0 %vm209_vm0, %v170_v57  ;;  %v365_v50 = vpop.permute.xlu0 %364 }
  0xe9   :  { %634 = vmatprep.mubr.msk.f32.mxu0 %vm209_vm0, %v171_v58 }
  0xea   :  { %v191_v9 = vpop.permute.xlu1 %190 }
  0xec   :  { %635 = vmatmul.mubr.msk.f32.gmra.mrb[2].mxu0 %vm209_vm0, %v172_v59 }
  0xed   :  { %637 = vmatprep.mubr.msk.f32.mxu0 %vm209_vm0, %v173_v60 }
  0xee   :  { %v199_v18 = vpop.permute.xlu1 %198 }
  0xf0   :  { %638 = vmatmul.mubr.msk.f32.gmra.mrb[4].mxu0 %vm209_vm0, %v174_v61 }
  0xf1   :  { %640 = vmatprep.mubr.msk.f32.mxu0 %vm209_vm0, %v175_v62 }
  0xf2   :  { %v207_v30 = vpop.permute.xlu1 %206 }
  0xf4   :  { %641 = vmatmul.mubr.msk.f32.gmra.mrb[6].mxu0 %vm209_vm0, %v176_v63 }
  0xf7   :  { %v355_v45 = vpop.permute.xlu1 %354 }
  0xfb   :  { %v360_v52 = vpop.permute.xlu1 %359 }
  0xff   :  { %v470_v59 = vpop.permute.xlu1 %469 }
 0x157   :  { %v467_v60 = vpop.permute.xlu0 %466 }
 0x1bb   :  { %v633_v10 = vpop.f32.mrb[0].mxu0 }
 0x1bc   :  { %v306_v11 = vadd.f32 %v633_v10, %v183_v8  ;;  %v300_v12 = vpop.f32.mrb[1].mxu0 }
 0x1bd   :  { %v301_v13 = vadd.f32 %v300_v12, %v179_v6 }
 0x1be   :  { %v340_v14 = vmax.f32 %v306_v11, 0.0 }
 0x1bf   :  { %v339_v15 = vmax.f32 %v301_v13, 0.0  ;;  %v636_v16 = vpop.f32.mrb[2].mxu0 }
 0x1c0   :  { %v316_v17 = vadd.f32 %v636_v16, %v191_v9  ;;  %v310_v2 = vpop.f32.mrb[3].mxu0 }
 0x1c1   :  { %v311_v19 = vadd.f32 %v310_v2, %v187_v7  ;;  %v692_v20 = vpack.c.bf16 %v340_v14, %v339_v15 }
 0x1c2   :  { %v342_v22 = vmax.f32 %v316_v17, 0.0 }
 0x1c3   :  { %v341_v23 = vmax.f32 %v311_v19, 0.0  ;;  %v639_v24 = vpop.f32.mrb[4].mxu0  ;;  %693 = vmatprep.subr.bf16.mxu1 %v692_v20 }
 0x1c4   :  { %v326_v25 = vadd.f32 %v639_v24, %v199_v18  ;;  %v320_v26 = vpop.f32.mrb[5].mxu0  ;;  %695 = vmatpush3.bf16.msra.mxu1 %v692_v20 }
 0x1c5   :  { %v696_v27 = vpack.c.bf16 %v342_v22, %v341_v23  ;;  %v321_v28 = vadd.f32 %v320_v26, %v195_v21 }
 0x1c6   :  { %v344_v29 = vmax.f32 %v326_v25, 0.0 }
 0x1c7   :  { %v343_v31 = vmax.f32 %v321_v28, 0.0  ;;  %v642_v32 = vpop.f32.mrb[6].mxu0  ;;  %697 = vmatprep.subr.bf16.mxu1 %v696_v27 }
 0x1c8   :  { %v336_v34 = vadd.f32 %v642_v32, %v207_v30  ;;  %v330_v35 = vpop.f32.mrb[7].mxu0  ;;  %699 = vmatpush3.bf16.msra.mxu1 %v696_v27 }
 0x1c9   :  { %v700_v36 = vpack.c.bf16 %v344_v29, %v343_v31  ;;  %v331_v37 = vadd.f32 %v330_v35, %v203_v33 }
 0x1ca   :  { %v346_v38 = vmax.f32 %v336_v34, 0.0 }
 0x1cb   :  { %v345_v39 = vmax.f32 %v331_v37, 0.0  ;;  %701 = vmatprep.subr.bf16.mxu1 %v700_v36 }
 0x1cc   :  { %703 = vmatpush3.bf16.msra.mxu1 %v700_v36 }
 0x1cd   :  { %v704_v40 = vpack.c.bf16 %v346_v38, %v345_v39 }
 0x1cf   :  { %705 = vmatprep.subr.bf16.mxu1 %v704_v40 }
 0x1d0   :  { %707 = vmatpush3.bf16.msra.mxu1 %v704_v40 }
 0x1d1   :  { %708 = vmatprep.subr.bf16.mxu1 %v851_v41 }
 0x1d3   :  { %660 = vmatmul.mubr.msk.f32.vlgmr.msra.gmra.mrb[0].mxu1 %vm209_vm0, %v922_v3 }
 0x1d4   :  { %662 = vmatprep.mubr.msk.f32.mxu1 %vm209_vm0, %v924_v4 }
 0x1d7   :  { %663 = vmatmul.mubr.msk.f32.gmra.mrb[2].mxu1 %vm209_vm0, %v928_v5 }
 0x1d8   :  { %673 = vmatprep.mubr.msk.f32.mxu1 %vm852_vm1, %v853_v42 }
 0x2a6   :  { %v661_v46 = vpop.f32.mrb[0].mxu1 }
 0x2a7   :  { %v447_v47 = vadd.f32 %v661_v46, %v355_v45  ;;  %v441_v48 = vpop.f32.mrb[1].mxu1 }
 0x2a8   :  { %v442_v3 = vadd.f32 %v441_v48, %v350_v44 }
 0x2a9   :  { %v461_v49 = vmax.f32 %v447_v47, 0.0 }
 0x2aa   :  { %v460_v4 = vmax.f32 %v442_v3, 0.0  ;;  %v664_v51 = vpop.f32.mrb[2].mxu1 }
 0x2ab   :  { %v457_v5 = vadd.f32 %v664_v51, %v365_v50  ;;  %v451_v53 = vpop.f32.mrb[3].mxu1 }
 0x2ac   :  { %v709_v54 = vpack.c.bf16 %v461_v49, %v460_v4  ;;  %v452_v55 = vadd.f32 %v451_v53, %v360_v52 }
 0x2ad   :  { %v463_v56 = vmax.f32 %v457_v5, 0.0 }
 0x2ae   :  { %v462_v57 = vmax.f32 %v452_v55, 0.0  ;;  %710 = vmatpush3.bf16.msra.mxu1 %v709_v54 }
 0x2af   :  { %711 = vmatprep.subr.bf16.mxu1 %v851_v41 }
 0x2b0   :  { %v712_v58 = vpack.c.bf16 %v463_v56, %v462_v57 }
 0x2b2   :  { %713 = vmatpush3.bf16.msra.mxu1 %v712_v58 }
 0x2b5   :  { %674 = vmatmul.mubr.msk.f32.vlgmr.msra.gmra.mrb[4].mxu1 %vm471_vm2, %v470_v59 }
 0x388   :  { %v540_v61 = vpop.f32.mrb[4].mxu1 }
 0x389   :  { %v541_v62 = vadd.f32 %v540_v61, %v467_v60  ;;  %v675_v63 = vpop.f32.mrb[5].mxu1 }
 0x38b   :  { %v544_v0 = vmul.f32 1.442695, %v541_v62  ;;  %v546_v7 = vsub.f32 %v55_v1, %v541_v62 }
 0x38d   :  { %745 = vpow2.f32 %v544_v0 }
 0x397   :  { %v746_v6 = vpop.eup %745 }
 0x398   :  { %v548_v8 = vrot.slane %v746_v6, 1 }
 0x39a   :  { %v550_v9 = vmul.f32 %v548_v8, %v546_v7 }
 0x39c   :  { %551 = vst [vmem:[#allocation8] sm:$0x1] %v550_v9 }
 0x39d   :  { %824 = shalt.err (!%p821_p0)
}
 0x39e   :  { %s825_s27 = scalar_lea.hbm %s973_s3, 16 }
 0x39f   :  { %p826_p1 = scmp.ne.s32.totalorder %s973_s3, %s825_s27  ;;  %p829_p2 = scmp.lt.u32.totalorder %s825_s27, %s973_s3 }
 0x3a1   :  { %p831_p3 = pnand %p829_p2, %p826_p1 }
 0x3a3   :  { %834 = shalt.err (!%p831_p3)
}
 0x3a4   :  { %561 = dma.vmem_to_hbm [thread:$0]  %s559_s22, 16, %s973_s3, [#allocation4]  }
 0x3a5   :  { %839 = dma.done.wait [#allocation4], 16  }
 0x3a6   :  { %840 = vsyncadd [#allocation4], 4294967280 }
 0x3a7   :  { %565 = vsyncpa [#allocation3], 1 }
 0x3a8   :  { %566 = vsyncpa [#allocation6], 1 }
 0x3a9   :  { %567 = vsyncpa [#allocation4], 1 }

// kernel: tpu_custom_call.1
= control target key start
LH: loop header
LB: loop body
LE: loop exit
PB: predicated region body
PF: predicated region fallthrough
CT: control target
= control target key end

     0   :  { %8 = vsyncpa [#allocation3], 0  ;;  %s970_s0 = inlined_call_operand.hbm [shape: f32[2,128], index: 0, kind: input, shape index: {}]   ;;  %s971_s1 = inlined_call_operand.hbm [shape: f32[64,128], index: 1, kind: input, shape index: {}]   ;;  %s972_s2 = inlined_call_operand.hbm [shape: f32[64,64], index: 2, kind: input, shape index: {}]   ;;  %s973_s3 = inlined_call_operand.hbm [shape: f32[1,128], index: 3, kind: output, shape index: {}]  }
   0x1   :  { %9 = vsyncpa [#allocation6], 0 }
   0x2   :  { %10 = vsyncpa [#allocation4], 0  ;;  %s841_s12 = smov [#allocation5]   ;;  %s747_s16 = scalar_lea.hbm %s971_s1, 1024 }
   0x3   :  { %s26_s13 = sshll.u32 %s841_s12, 4  ;;  %p748_p0 = scmp.ne.s32.totalorder %s971_s1, %s747_s16  ;;  %s27_s13 = int_to_ptr.vmem [resolvable:$true] %s26_s13 }
   0x4   :  { %p751_p1 = scmp.lt.u32.totalorder %s747_s16, %s971_s1 }
   0x6   :  { %p753_p2 = pnand %p751_p1, %p748_p0 }
   0x8   :  { %756 = shalt.err (!%p753_p2)
}
   0x9   :  { %s757_s21 = scalar_lea.vmem %s27_s13, 1024  ;;  %p762_p4 = scmp.lt.s32.totalorder %s27_s13, %s27_s13 }
   0xa   :  { %p758_p3 = scmp.ne.s32.totalorder %s27_s13, %s757_s21  ;;  %p763_p5 = scmp.lt.s32.totalorder %s757_s21, %s757_s21 }
   0xc   :  { %p764_p6 = por %p763_p5, %p762_p4 }
   0xe   :  { %p765_p7 = pnand %p764_p6, %p758_p3 }
  0x10   :  { %768 = shalt.err (!%p765_p7)
}
  0x11   :  { %s842_s22 = smov 128   ;;  %s843_s23 = smov 8  }
  0x12   :  { %32 = dma.hbm_to_vmem [thread:$0]  %s971_s1, 1024, %s27_s13, [#allocation6], %s842_s22, %s842_s22, %s843_s23  }
  0x13   :  { %s844_s26 = smov [#allocation2]   ;;  %s845_s28 = smov [#allocation7]  }
  0x14   :  { %s17_s27 = sshll.u32 %s844_s26, 4  ;;  %s38_s29 = sshll.u32 %s845_s28, 4  ;;  %s18_s27 = int_to_ptr.vmem [resolvable:$true] %s17_s27  ;;  %s39_s29 = int_to_ptr.vmem [resolvable:$true] %s38_s29 }
  0x15   :  { %s769_s5 = scalar_lea.hbm %s970_s0, 32 }
  0x16   :  { %p770_p8 = scmp.ne.s32.totalorder %s970_s0, %s769_s5  ;;  %p773_p9 = scmp.lt.u32.totalorder %s769_s5, %s970_s0 }
  0x18   :  { %p775_p10 = pnand %p773_p9, %p770_p8 }
  0x1a   :  { %778 = shalt.err (!%p775_p10)
}
  0x1b   :  { %s779_s1 = scalar_lea.vmem %s18_s27, 32  ;;  %p784_p12 = scmp.lt.s32.totalorder %s18_s27, %s18_s27 }
  0x1c   :  { %p780_p11 = scmp.ne.s32.totalorder %s18_s27, %s779_s1  ;;  %p785_p13 = scmp.lt.s32.totalorder %s779_s1, %s779_s1 }
  0x1e   :  { %p786_p0 = por %p785_p13, %p784_p12 }
  0x20   :  { %p787_p1 = pnand %p786_p0, %p780_p11 }
  0x22   :  { %790 = shalt.err (!%p787_p1)
}
  0x23   :  { %20 = dma.hbm_to_vmem [thread:$0]  %s970_s0, 32, %s18_s27, [#allocation3]  }
  0x24   :  { %s791_s14 = scalar_lea.hbm %s972_s2, 1024 }
  0x25   :  { %p792_p2 = scmp.ne.s32.totalorder %s972_s2, %s791_s14  ;;  %p795_p3 = scmp.lt.u32.totalorder %s791_s14, %s972_s2 }
  0x27   :  { %p797_p4 = pnand %p795_p3, %p792_p2 }
  0x29   :  { %800 = shalt.err (!%p797_p4)
}
  0x2a   :  { %s801_s19 = scalar_lea.vmem %s39_s29, 1024  ;;  %p806_p6 = scmp.lt.s32.totalorder %s39_s29, %s39_s29 }
  0x2b   :  { %p802_p5 = scmp.ne.s32.totalorder %s39_s29, %s801_s19  ;;  %p807_p7 = scmp.lt.s32.totalorder %s801_s19, %s801_s19 }
  0x2d   :  { %p808_p8 = por %p807_p7, %p806_p6 }
  0x2f   :  { %p809_p9 = pnand %p808_p8, %p802_p5 }
  0x31   :  { %812 = shalt.err (!%p809_p9)
}
  0x32   :  { %44 = dma.hbm_to_vmem [thread:$0]  %s972_s2, 1024, %s39_s29, [#allocation6], %s842_s22, %s842_s22, %s843_s23  }
  0x33   :  { %835 = dma.done.wait [#allocation3], 32  }
  0x34   :  { %836 = vsyncadd [#allocation3], 4294967264 }
  0x35   :  { %837 = dma.done.wait [#allocation6], 2048  }
  0x36   :  { %838 = vsyncadd [#allocation6], 4294965248  ;;  %v846_v0 = vmov 65   ;;  %v847_v1 = vmov 64   ;;  %v918_v2 = vld [vmem:[#allocation5] sm:$0xff]  ;;  %v922_v3 = vld [vmem:[#allocation5 + $0x8] sm:$0xff] }
  0x37   :  { %730 = vset.pattern.permute.xlu1 %v846_v0  ;;  %729 = vset.pattern.permute.xlu0 %v847_v1  ;;  %v924_v4 = vld [vmem:[#allocation5 + $0x10] sm:$0xff]  ;;  %v928_v5 = vld [vmem:[#allocation5 + $0x18] sm:$0xff]  ;;  %v65_v6 = vld [vmem:[#allocation5 + $0x28] sm:$0xff]  ;;  %vm209_vm0 = vcmask 523264   ;;  %v848_v11 = vmov 66   ;;  %s850_s2 = smov 60  }
  0x38   :  { %122 = vperm.xlu1 %730, %v918_v2   ;;  %71 = vperm.xlu0 %729, %v918_v2   ;;  %v64_v7 = vld [vmem:[#allocation5 + $0x20] sm:$0xff]  ;;  %v66_v8 = vld [vmem:[#allocation5 + $0x30] sm:$0xff]  ;;  %v67_v9 = vld [vmem:[#allocation5 + $0x38] sm:$0xff]  ;;  %vm852_vm1 = vmmov 0   ;;  %vm471_vm2 = vcmask 261120   ;;  %s855_s21 = smov [#allocation8]  }
  0x39   :  { %v169_v10 = vld [vmem:[#allocation7] sm:$0xff]  ;;  %659 = vmatprep.mubr.msk.f32.mxu1 %vm209_vm0, %v918_v2  ;;  %v568_v14 = vld [vmem:[#allocation2] ss:$0 sm:$0xff]  ;;  %v170_v57 = vld [vmem:[#allocation7 + $0x8] sm:$0xff]  ;;  %s558_s22 = sshll.u32 %s855_s21, 4  ;;  %s559_s22 = int_to_ptr.vmem [resolvable:$true] %s558_s22 }
  0x3a   :  { %631 = vmatprep.mubr.msk.f32.mxu0 %vm209_vm0, %v169_v10  ;;  %v171_v58 = vld [vmem:[#allocation7 + $0x10] sm:$0xff]  ;;  %v172_v59 = vld [vmem:[#allocation7 + $0x18] sm:$0xff]  ;;  %v173_v60 = vld [vmem:[#allocation7 + $0x20] sm:$0xff]  ;;  %s813_s23 = scalar_lea.vmem %s559_s22, 16  ;;  %s817_s24 = scalar_lea.vmem %s559_s22, 32 }
  0x3b   :  { %v174_v61 = vld [vmem:[#allocation7 + $0x28] sm:$0xff]  ;;  %v175_v62 = vld [vmem:[#allocation7 + $0x30] sm:$0xff]  ;;  %v176_v63 = vld [vmem:[#allocation7 + $0x38] sm:$0xff]  ;;  %p814_p10 = scmp.ne.s32.totalorder %s559_s22, %s813_s23  ;;  %p818_p11 = scmp.lt.s32.totalorder %s559_s22, %s559_s22 }
  0x3c   :  { %126 = vperm.xlu1 %730, %v922_v3   ;;  %732 = vset.pattern.permute.xlu0 %v846_v0  ;;  %p819_p12 = scmp.lt.s32.totalorder %s817_s24, %s813_s23 }
  0x3d   :  { %130 = vperm.xlu0 %732, %v924_v4  }
  0x3e   :  { %p820_p13 = por %p819_p12, %p818_p11 }
  0x40   :  { %731 = vset.pattern.permute.xlu1 %v847_v1  ;;  %p821_p0 = pnand %p820_p13, %p814_p10 }
  0x41   :  { %86 = vperm.xlu1 %731, %v928_v5   ;;  %733 = vset.pattern.permute.xlu0 %v847_v1 }
  0x42   :  { %76 = vperm.xlu0 %733, %v922_v3  }
  0x45   :  { %734 = vset.pattern.permute.xlu1 %v846_v0 }
  0x46   :  { %134 = vperm.xlu1 %734, %v928_v5   ;;  %81 = vperm.xlu0 %733, %v924_v4  }
  0x4a   :  { %735 = vset.pattern.permute.xlu1 %v847_v1  ;;  %96 = vperm.xlu0 %733, %v65_v6  }
  0x4b   :  { %91 = vperm.xlu1 %735, %v64_v7  }
  0x4e   :  { %101 = vperm.xlu0 %733, %v66_v8  }
  0x4f   :  { %736 = vset.pattern.permute.xlu1 %v846_v0 }
  0x50   :  { %138 = vperm.xlu1 %736, %v64_v7  }
  0x52   :  { %738 = vset.pattern.permute.xlu0 %v846_v0 }
  0x53   :  { %146 = vperm.xlu0 %738, %v66_v8  }
  0x54   :  { %142 = vperm.xlu1 %736, %v65_v6  }
  0x57   :  { %741 = vset.pattern.permute.xlu0 %v848_v11 }
  0x58   :  { %737 = vset.pattern.permute.xlu1 %v847_v1  ;;  %182 = vperm.xlu0 %741, %v922_v3   ;;  %v68_v1 = vld [vmem:[#allocation5] sm:$0x3] }
  0x59   :  { %106 = vperm.xlu1 %737, %v67_v9  }
  0x5c   :  { %194 = vperm.xlu0 %741, %v64_v7  }
  0x5d   :  { %739 = vset.pattern.permute.xlu1 %v846_v0  ;;  %v849_v0 = vmov 67  }
  0x5e   :  { %150 = vperm.xlu1 %739, %v67_v9  }
  0x60   :  { %202 = vperm.xlu0 %741, %v66_v8  }
  0x62   :  { %740 = vset.pattern.permute.xlu1 %v848_v11 }
  0x63   :  { %178 = vperm.xlu1 %740, %v918_v2  }
  0x64   :  { %742 = vset.pattern.permute.xlu0 %v849_v0 }
  0x65   :  { %349 = vperm.xlu0 %742, %v918_v2  }
  0x67   :  { %186 = vperm.xlu1 %740, %v924_v4  }
  0x69   :  { %364 = vperm.xlu0 %742, %v928_v5  }
  0x6b   :  { %190 = vperm.xlu1 %740, %v928_v5  }
  0x6f   :  { %198 = vperm.xlu1 %740, %v65_v6  }
  0x73   :  { %206 = vperm.xlu1 %740, %v67_v9  }
  0x77   :  { %743 = vset.pattern.permute.xlu1 %v849_v0 }
  0x78   :  { %354 = vperm.xlu1 %743, %v922_v3  }
  0x7c   :  { %359 = vperm.xlu1 %743, %v924_v4  }
  0x80   :  { %469 = vrot.lane.b32.xlu1 %v68_v1, %s850_s2 }
  0xb7   :  { %v123_v12 = vpop.permute.xlu1 %122  ;;  %v72_v13 = vpop.permute.xlu0 %71 }
  0xb8   :  { %v113_v17 = vmul.f32 %v568_v14, %v72_v13 }
  0xba   :  { %v153_v20 = vadd.f32 %v123_v12, %v113_v17 }
  0xbb   :  { %v127_v15 = vpop.permute.xlu1 %126 }
  0xbc   :  { %v131_v16 = vpop.permute.xlu0 %130  ;;  %v161_v26 = vmax.f32 %v153_v20, 0.0 }
  0xc0   :  { %v87_v18 = vpop.permute.xlu1 %86 }
  0xc1   :  { %v77_v19 = vpop.permute.xlu0 %76  ;;  %v116_v22 = vmul.f32 %v568_v14, %v87_v18 }
  0xc2   :  { %v114_v21 = vmul.f32 %v568_v14, %v77_v19 }
  0xc4   :  { %v154_v23 = vadd.f32 %v127_v15, %v114_v21 }
  0xc5   :  { %v135_v24 = vpop.permute.xlu1 %134  ;;  %v82_v25 = vpop.permute.xlu0 %81 }
  0xc6   :  { %v162_v27 = vmax.f32 %v154_v23, 0.0  ;;  %v156_v28 = vadd.f32 %v135_v24, %v116_v22  ;;  %v115_v29 = vmul.f32 %v568_v14, %v82_v25 }
  0xc8   :  { %v155_v30 = vadd.f32 %v131_v16, %v115_v29  ;;  %v676_v31 = vpack.c.bf16 %v162_v27, %v161_v26  ;;  %v164_v32 = vmax.f32 %v156_v28, 0.0 }
  0xc9   :  { %v97_v36 = vpop.permute.xlu0 %96 }
  0xca   :  { %v163_v33 = vmax.f32 %v155_v30, 0.0  ;;  %v92_v34 = vpop.permute.xlu1 %91  ;;  %677 = vmatprep.subr.bf16.mxu0 %v676_v31  ;;  %v118_v39 = vmul.f32 %v568_v14, %v97_v36 }
  0xcb   :  { %679 = vmatpush3.bf16.msra.mxu0 %v676_v31  ;;  %v117_v38 = vmul.f32 %v568_v14, %v92_v34 }
  0xcc   :  { %v680_v35 = vpack.c.bf16 %v164_v32, %v163_v33 }
  0xcd   :  { %v102_v41 = vpop.permute.xlu0 %101 }
  0xce   :  { %681 = vmatprep.subr.bf16.mxu0 %v680_v35  ;;  %v119_v49 = vmul.f32 %v568_v14, %v102_v41  ;;  %v851_v41 = vmov 0.0|0.0  }
  0xcf   :  { %v139_v37 = vpop.permute.xlu1 %138  ;;  %683 = vmatpush3.bf16.msra.mxu0 %v680_v35 }
  0xd0   :  { %v157_v40 = vadd.f32 %v139_v37, %v117_v38 }
  0xd2   :  { %v165_v44 = vmax.f32 %v157_v40, 0.0  ;;  %v147_v48 = vpop.permute.xlu0 %146 }
  0xd3   :  { %v143_v42 = vpop.permute.xlu1 %142  ;;  %v159_v50 = vadd.f32 %v147_v48, %v119_v49 }
  0xd4   :  { %v158_v43 = vadd.f32 %v143_v42, %v118_v39  ;;  %v853_v42 = vmov 0.0  }
  0xd5   :  { %v167_v54 = vmax.f32 %v159_v50, 0.0 }
  0xd6   :  { %v166_v45 = vmax.f32 %v158_v43, 0.0  ;;  %v854_v43 = vmov 100  }
  0xd7   :  { %v183_v8 = vpop.permute.xlu0 %182  ;;  %744 = vset.pattern.permute.xlu0 %v854_v43 }
  0xd8   :  { %v684_v46 = vpack.c.bf16 %v166_v45, %v165_v44  ;;  %v107_v47 = vpop.permute.xlu1 %106  ;;  %466 = vperm.xlu0 %744, %v68_v1   ;;  %v55_v1 = vld [vmem:[#allocation2 + $0x1] sm:$0x1] }
  0xd9   :  { %v120_v51 = vmul.f32 %v568_v14, %v107_v47 }
  0xda   :  { %685 = vmatprep.subr.bf16.mxu0 %v684_v46 }
  0xdb   :  { %687 = vmatpush3.bf16.msra.mxu0 %v684_v46  ;;  %v195_v21 = vpop.permute.xlu0 %194 }
  0xdd   :  { %v151_v52 = vpop.permute.xlu1 %150 }
  0xde   :  { %v160_v53 = vadd.f32 %v151_v52, %v120_v51 }
  0xdf   :  { %v203_v33 = vpop.permute.xlu0 %202 }
  0xe0   :  { %v168_v55 = vmax.f32 %v160_v53, 0.0 }
  0xe2   :  { %v688_v56 = vpack.c.bf16 %v168_v55, %v167_v54  ;;  %v179_v6 = vpop.permute.xlu1 %178 }
  0xe4   :  { %689 = vmatprep.subr.bf16.mxu0 %v688_v56  ;;  %v350_v44 = vpop.permute.xlu0 %349 }
  0xe5   :  { %691 = vmatpush3.bf16.msra.mxu0 %v688_v56 }
  0xe6   :  { %v187_v7 = vpop.permute.xlu1 %186 }
  0xe8   :  { %632 = vmatmul.mubr.msk.f32.vlgmr.msra.gmra.mrb[0].mxu0 %vm209_vm0, %v170_v57  ;;  %v365_v50 = vpop.permute.xlu0 %364 }
  0xe9   :  { %634 = vmatprep.mubr.msk.f32.mxu0 %vm209_vm0, %v171_v58 }
  0xea   :  { %v191_v9 = vpop.permute.xlu1 %190 }
  0xec   :  { %635 = vmatmul.mubr.msk.f32.gmra.mrb[2].mxu0 %vm209_vm0, %v172_v59 }
  0xed   :  { %637 = vmatprep.mubr.msk.f32.mxu0 %vm209_vm0, %v173_v60 }
  0xee   :  { %v199_v18 = vpop.permute.xlu1 %198 }
  0xf0   :  { %638 = vmatmul.mubr.msk.f32.gmra.mrb[4].mxu0 %vm209_vm0, %v174_v61 }
  0xf1   :  { %640 = vmatprep.mubr.msk.f32.mxu0 %vm209_vm0, %v175_v62 }
  0xf2   :  { %v207_v30 = vpop.permute.xlu1 %206 }
  0xf4   :  { %641 = vmatmul.mubr.msk.f32.gmra.mrb[6].mxu0 %vm209_vm0, %v176_v63 }
  0xf7   :  { %v355_v45 = vpop.permute.xlu1 %354 }
  0xfb   :  { %v360_v52 = vpop.permute.xlu1 %359 }
  0xff   :  { %v470_v59 = vpop.permute.xlu1 %469 }
 0x157   :  { %v467_v60 = vpop.permute.xlu0 %466 }
 0x1bb   :  { %v633_v10 = vpop.f32.mrb[0].mxu0 }
 0x1bc   :  { %v306_v11 = vadd.f32 %v633_v10, %v183_v8  ;;  %v300_v12 = vpop.f32.mrb[1].mxu0 }
 0x1bd   :  { %v301_v13 = vadd.f32 %v300_v12, %v179_v6 }
 0x1be   :  { %v340_v14 = vmax.f32 %v306_v11, 0.0 }
 0x1bf   :  { %v339_v15 = vmax.f32 %v301_v13, 0.0  ;;  %v636_v16 = vpop.f32.mrb[2].mxu0 }
 0x1c0   :  { %v316_v17 = vadd.f32 %v636_v16, %v191_v9  ;;  %v310_v2 = vpop.f32.mrb[3].mxu0 }
 0x1c1   :  { %v311_v19 = vadd.f32 %v310_v2, %v187_v7  ;;  %v692_v20 = vpack.c.bf16 %v340_v14, %v339_v15 }
 0x1c2   :  { %v342_v22 = vmax.f32 %v316_v17, 0.0 }
 0x1c3   :  { %v341_v23 = vmax.f32 %v311_v19, 0.0  ;;  %v639_v24 = vpop.f32.mrb[4].mxu0  ;;  %693 = vmatprep.subr.bf16.mxu1 %v692_v20 }
 0x1c4   :  { %v326_v25 = vadd.f32 %v639_v24, %v199_v18  ;;  %v320_v26 = vpop.f32.mrb[5].mxu0  ;;  %695 = vmatpush3.bf16.msra.mxu1 %v692_v20 }
 0x1c5   :  { %v696_v27 = vpack.c.bf16 %v342_v22, %v341_v23  ;;  %v321_v28 = vadd.f32 %v320_v26, %v195_v21 }
 0x1c6   :  { %v344_v29 = vmax.f32 %v326_v25, 0.0 }
 0x1c7   :  { %v343_v31 = vmax.f32 %v321_v28, 0.0  ;;  %v642_v32 = vpop.f32.mrb[6].mxu0  ;;  %697 = vmatprep.subr.bf16.mxu1 %v696_v27 }
 0x1c8   :  { %v336_v34 = vadd.f32 %v642_v32, %v207_v30  ;;  %v330_v35 = vpop.f32.mrb[7].mxu0  ;;  %699 = vmatpush3.bf16.msra.mxu1 %v696_v27 }
 0x1c9   :  { %v700_v36 = vpack.c.bf16 %v344_v29, %v343_v31  ;;  %v331_v37 = vadd.f32 %v330_v35, %v203_v33 }
 0x1ca   :  { %v346_v38 = vmax.f32 %v336_v34, 0.0 }
 0x1cb   :  { %v345_v39 = vmax.f32 %v331_v37, 0.0  ;;  %701 = vmatprep.subr.bf16.mxu1 %v700_v36 }
 0x1cc   :  { %703 = vmatpush3.bf16.msra.mxu1 %v700_v36 }
 0x1cd   :  { %v704_v40 = vpack.c.bf16 %v346_v38, %v345_v39 }
 0x1cf   :  { %705 = vmatprep.subr.bf16.mxu1 %v704_v40 }
 0x1d0   :  { %707 = vmatpush3.bf16.msra.mxu1 %v704_v40 }
 0x1d1   :  { %708 = vmatprep.subr.bf16.mxu1 %v851_v41 }
 0x1d3   :  { %660 = vmatmul.mubr.msk.f32.vlgmr.msra.gmra.mrb[0].mxu1 %vm209_vm0, %v922_v3 }
 0x1d4   :  { %662 = vmatprep.mubr.msk.f32.mxu1 %vm209_vm0, %v924_v4 }
 0x1d7   :  { %663 = vmatmul.mubr.msk.f32.gmra.mrb[2].mxu1 %vm209_vm0, %v928_v5 }
 0x1d8   :  { %673 = vmatprep.mubr.msk.f32.mxu1 %vm852_vm1, %v853_v42 }
 0x2a6   :  { %v661_v46 = vpop.f32.mrb[0].mxu1 }
 0x2a7   :  { %v447_v47 = vadd.f32 %v661_v46, %v355_v45  ;;  %v441_v48 = vpop.f32.mrb[1].mxu1 }
 0x2a8   :  { %v442_v3 = vadd.f32 %v441_v48, %v350_v44 }
 0x2a9   :  { %v461_v49 = vmax.f32 %v447_v47, 0.0 }
 0x2aa   :  { %v460_v4 = vmax.f32 %v442_v3, 0.0  ;;  %v664_v51 = vpop.f32.mrb[2].mxu1 }
 0x2ab   :  { %v457_v5 = vadd.f32 %v664_v51, %v365_v50  ;;  %v451_v53 = vpop.f32.mrb[3].mxu1 }
 0x2ac   :  { %v709_v54 = vpack.c.bf16 %v461_v49, %v460_v4  ;;  %v452_v55 = vadd.f32 %v451_v53, %v360_v52 }
 0x2ad   :  { %v463_v56 = vmax.f32 %v457_v5, 0.0 }
 0x2ae   :  { %v462_v57 = vmax.f32 %v452_v55, 0.0  ;;  %710 = vmatpush3.bf16.msra.mxu1 %v709_v54 }
 0x2af   :  { %711 = vmatprep.subr.bf16.mxu1 %v851_v41 }
 0x2b0   :  { %v712_v58 = vpack.c.bf16 %v463_v56, %v462_v57 }
 0x2b2   :  { %713 = vmatpush3.bf16.msra.mxu1 %v712_v58 }
 0x2b5   :  { %674 = vmatmul.mubr.msk.f32.vlgmr.msra.gmra.mrb[4].mxu1 %vm471_vm2, %v470_v59 }
 0x388   :  { %v540_v61 = vpop.f32.mrb[4].mxu1 }
 0x389   :  { %v541_v62 = vadd.f32 %v540_v61, %v467_v60  ;;  %v675_v63 = vpop.f32.mrb[5].mxu1 }
 0x38b   :  { %v544_v0 = vmul.f32 1.442695, %v541_v62  ;;  %v546_v7 = vsub.f32 %v55_v1, %v541_v62 }
 0x38d   :  { %745 = vpow2.f32 %v544_v0 }
 0x397   :  { %v746_v6 = vpop.eup %745 }
 0x398   :  { %v548_v8 = vrot.slane %v746_v6, 1 }
 0x39a   :  { %v550_v9 = vmul.f32 %v548_v8, %v546_v7 }
 0x39c   :  { %551 = vst [vmem:[#allocation8] sm:$0x1] %v550_v9 }
 0x39d   :  { %824 = shalt.err (!%p821_p0)
}
 0x39e   :  { %s825_s27 = scalar_lea.hbm %s973_s3, 16 }
 0x39f   :  { %p826_p1 = scmp.ne.s32.totalorder %s973_s3, %s825_s27  ;;  %p829_p2 = scmp.lt.u32.totalorder %s825_s27, %s973_s3 }
 0x3a1   :  { %p831_p3 = pnand %p829_p2, %p826_p1 }
 0x3a3   :  { %834 = shalt.err (!%p831_p3)
}
 0x3a4   :  { %561 = dma.vmem_to_hbm [thread:$0]  %s559_s22, 16, %s973_s3, [#allocation4]  }
 0x3a5   :  { %839 = dma.done.wait [#allocation4], 16  }
 0x3a6   :  { %840 = vsyncadd [#allocation4], 4294967280 }
 0x3a7   :  { %565 = vsyncpa [#allocation3], 1 }
 0x3a8   :  { %566 = vsyncpa [#allocation6], 1 }
 0x3a9   :  { %567 = vsyncpa [#allocation4], 1 }

</bundles_post_ra>
